<compile_context>
chip_gen: v7x
topology: tpu7x:2x2x1
jax: 0.10.0
libtpu: 0.0.40
codegen_flags: <defaults>
</compile_context>

<pallas_src>
import functools

import jax
import jax.numpy as jnp
from jax.experimental import pallas as pl
from jax.experimental.pallas import tpu as pltpu


def _group_max_broadcast(x, group):
    """Exact per-group max along the last (lane) axis, broadcast back so every
    lane carries its own group's max.  Static lane slices + small reductions +
    one lane-axis concatenate; reads only, no masked stores."""
    n = x.shape[-1]
    pieces = []
    for start in range(0, n, group):
        seg = x[:, start:start + group]
        m = jnp.max(seg, axis=-1, keepdims=True)
        pieces.append(jnp.broadcast_to(m, seg.shape))
    return jnp.concatenate(pieces, axis=-1)


def actor_kernel(s_ref, w1_ref, b1_ref, w2_ref, b2_ref, w3_ref, b3_ref,
                 bd_ref, o_ref, *, n_mid):
    """Whole Actor forward: 3 linears (+ReLU) + lane-dense grouped softmax."""
    x = s_ref[...].astype(jnp.bfloat16)

    h1 = jnp.maximum(
        jnp.dot(x, w1_ref[...], preferred_element_type=jnp.float32)
        + b1_ref[...], 0.0)
    h2 = jnp.maximum(
        jnp.dot(h1.astype(jnp.bfloat16), w2_ref[...],
                preferred_element_type=jnp.float32) + b2_ref[...], 0.0)
    logits = (jnp.dot(h2.astype(jnp.bfloat16), w3_ref[...],
                      preferred_element_type=jnp.float32) + b3_ref[...])

    # Exact per-group max stabiliser: every group contains exp(0)=1, so the
    # per-group denominator is always >= 1 (no underflow guard needed).
    gmax = _group_max_broadcast(logits, n_mid)
    e = jnp.exp(logits - gmax)                 # one full-width EUP pass, f32
    eb = e.astype(jnp.bfloat16)                # cast once, reused twice

    # Per-group sums broadcast to every lane of the group via ONE native bf16
    # MXU matmul against the constant block-diagonal ones matrix.
    denom = jnp.dot(eb, bd_ref[...], preferred_element_type=jnp.float32)
    inv = pl.reciprocal(denom, approx=True)    # EUP; frees the VPU divide

    # One unmasked, lane-dense full-width store.
    o_ref[...] = (eb * inv).astype(o_ref.dtype)


def prepare_actor_params(params, n_in, n_out, n_mid):
    """One-time parameter preparation (hoisted out of the inference path):
    bf16 weights for native MXU passes + the constant bf16 block-diagonal
    group-sum matrix.  Call once; reuse the result for every forward."""
    w1, b1, w2, b2, w3, b3 = params
    n_total = n_in * n_out * n_mid
    assert w3.shape[1] == n_total
    gid = jnp.arange(n_total, dtype=jnp.int32) // n_mid
    bd = (gid[:, None] == gid[None, :]).astype(jnp.bfloat16)   # 0/1 exact in bf16
    return (w1.astype(jnp.bfloat16), b1.reshape(1, -1).astype(jnp.float32),
            w2.astype(jnp.bfloat16), b2.reshape(1, -1).astype(jnp.float32),
            w3.astype(jnp.bfloat16), b3.reshape(1, -1).astype(jnp.float32),
            bd)


def _pick_batch_tile(batch, max_tile=1024, min_steps=2):
    """Largest tile that divides batch, is a multiple of 8 (sublane), is
    <= max_tile, and leaves >= min_steps grid steps when batch >= 16 so both
    v7x TensorCores get work.  Falls back to the whole batch otherwise."""
    if batch % 8 != 0 or batch <= 8:
        return batch
    cap = max(8, min(max_tile, (batch // min_steps) // 8 * 8))
    for t in range(cap, 7, -8):
        if batch % t == 0:
            return t
    return batch


@functools.partial(jax.jit, static_argnames=("n_mid", "out_dtype"))
def actor_forward(s, prepared, n_mid, out_dtype=jnp.float32):
    """Pallas Actor forward.  `prepared` = prepare_actor_params(...).
    Pass out_dtype=jnp.bfloat16 to halve the output HBM stream at large batch
    (v5e/v6e) when the consumer tolerates bf16 probabilities."""
    w1, b1, w2, b2, w3, b3, bd = prepared
    batch, input_size = s.shape
    hidden = w1.shape[1]
    hidden2 = w2.shape[1]
    n_total = w3.shape[1]

    tile_b = _pick_batch_tile(batch)
    grid = (batch // tile_b,)
    resident = lambda i: (0, 0)   # weights / biases / bd: VMEM-resident

    kernel = functools.partial(actor_kernel, n_mid=n_mid)
    return pl.pallas_call(
        kernel,
        out_shape=jax.ShapeDtypeStruct((batch, n_total), out_dtype),
        grid=grid,
        in_specs=[
            pl.BlockSpec((tile_b, input_size), lambda i: (i, 0)),
            pl.BlockSpec((input_size, hidden), resident),
            pl.BlockSpec((1, hidden), resident),
            pl.BlockSpec((hidden, hidden2), resident),
            pl.BlockSpec((1, hidden2), resident),
            pl.BlockSpec((hidden2, n_total), resident),
            pl.BlockSpec((1, n_total), resident),
            pl.BlockSpec((n_total, n_total), resident),
        ],
        out_specs=pl.BlockSpec((tile_b, n_total), lambda i: (i, 0)),
        compiler_params=pltpu.CompilerParams(
            dimension_semantics=("parallel",)),   # batch rows shard across TCs
    )(s, w1, b1, w2, b2, w3, b3, bd)


def actor_reference(s, params, n_in, n_out, n_mid):
    """Plain-JAX f32 reference replicating the PyTorch forward."""
    w1, b1, w2, b2, w3, b3 = params
    x = jax.nn.relu(s @ w1 + b1)
    x = jax.nn.relu(x @ w2 + b2)
    x = x @ w3 + b3
    x = x.reshape(-1, n_in * n_out, n_mid)
    x = jax.nn.softmax(x, axis=2)
    return x.reshape(-1, n_in * n_out * n_mid)


def init_params(key, input_size, hidden_size, n_total):
    """Deterministic init mimicking nn.Linear's U(-1/sqrt(fan_in), +...)."""
    def linear(k, fan_in, fan_out):
        kw, kb = jax.random.split(k)
        bound = 1.0 / jnp.sqrt(jnp.float32(fan_in))
        w = jax.random.uniform(kw, (fan_in, fan_out), jnp.float32, -bound, bound)
        b = jax.random.uniform(kb, (1, fan_out), jnp.float32, -bound, bound)
        return w, b

    k1, k2, k3 = jax.random.split(key, 3)
    h2 = hidden_size // 2
    w1, b1 = linear(k1, input_size, hidden_size)
    w2, b2 = linear(k2, hidden_size, h2)
    w3, b3 = linear(k3, h2, n_total)
    return (w1, b1, w2, b2, w3, b3)


if __name__ == "__main__":
    batch = 8
    input_size = 32
    hidden_size = 64                 # hidden_size // 2 = 32
    N_in, N_out, N_mid = 2, 4, 16
    n_total = N_in * N_out * N_mid   # 128 -> exactly one lane width

    key = jax.random.PRNGKey(0)
    k_s, k_p, k_s2 = jax.random.split(key, 3)
    s = jax.random.normal(k_s, (batch, input_size), jnp.float32)
    params = init_params(k_p, input_size, hidden_size, n_total)
    prepared = prepare_actor_params(params, N_in, N_out, N_mid)  # one-time prep

    out = jax.block_until_ready(actor_forward(s, prepared, n_mid=N_mid))
    ref = actor_reference(s, params, N_in, N_out, N_mid)
    assert out.shape == (batch, n_total)
    # bf16 MXU operands + approx reciprocal -> loosened tolerance vs f32 ref.
    assert jnp.allclose(out, ref, rtol=2e-2, atol=2e-2), "mismatch vs reference"
    gsum = out.reshape(batch, N_in * N_out, N_mid).sum(-1)
    assert jnp.allclose(gsum, 1.0, atol=1e-2), "softmax groups do not sum to 1"

    # Larger batch exercises the multi-step "parallel" grid (2 TCs on v7x)
    # with the same resident prepared parameters.
    s2 = jax.random.normal(k_s2, (32, input_size), jnp.float32)
    out2 = jax.block_until_ready(actor_forward(s2, prepared, n_mid=N_mid))
    ref2 = actor_reference(s2, params, N_in, N_out, N_mid)
    assert out2.shape == (32, n_total)
    assert jnp.allclose(out2, ref2, rtol=2e-2, atol=2e-2), "batch=32 mismatch"

    print("KERNEL_OK")
</pallas_src>

<mosaic_0001>
module attributes {stable_mosaic.version = 11 : i64} {
  func.func @actor_kernel(%arg0: i32, %arg1: memref<8x32xf32, #tpu.memory_space<vmem>>, %arg2: memref<32x64xbf16, #tpu.memory_space<vmem>>, %arg3: memref<1x64xf32, #tpu.memory_space<vmem>>, %arg4: memref<64x32xbf16, #tpu.memory_space<vmem>>, %arg5: memref<1x32xf32, #tpu.memory_space<vmem>>, %arg6: memref<32x128xbf16, #tpu.memory_space<vmem>>, %arg7: memref<1x128xf32, #tpu.memory_space<vmem>>, %arg8: memref<128x128xbf16, #tpu.memory_space<vmem>>, %arg9: memref<8x128xf32, #tpu.memory_space<vmem>>) attributes {dimension_semantics = [#tpu.dimension_semantics<parallel>], iteration_bounds = array<i64: 1>, scalar_prefetch = 0 : i64, scratch_operands = 0 : i64, tpu.core_type = #tpu.core_type<tc>, window_params = [{transform_indices = @transform_0, window_bounds = array<i64: 8, 32>}, {pipeline_mode = #tpu.pipeline_mode<synchronous>, transform_indices = @transform_1, window_bounds = array<i64: 32, 64>}, {pipeline_mode = #tpu.pipeline_mode<synchronous>, transform_indices = @transform_2, window_bounds = array<i64: 1, 64>}, {pipeline_mode = #tpu.pipeline_mode<synchronous>, transform_indices = @transform_3, window_bounds = array<i64: 64, 32>}, {pipeline_mode = #tpu.pipeline_mode<synchronous>, transform_indices = @transform_4, window_bounds = array<i64: 1, 32>}, {pipeline_mode = #tpu.pipeline_mode<synchronous>, transform_indices = @transform_5, window_bounds = array<i64: 32, 128>}, {pipeline_mode = #tpu.pipeline_mode<synchronous>, transform_indices = @transform_6, window_bounds = array<i64: 1, 128>}, {pipeline_mode = #tpu.pipeline_mode<synchronous>, transform_indices = @transform_7, window_bounds = array<i64: 128, 128>}, {transform_indices = @transform_8, window_bounds = array<i64: 8, 128>}]} {
    %c0 = arith.constant 0 : index
    %c0_0 = arith.constant 0 : index
    %0 = vector.load %arg1[%c0, %c0_0] : memref<8x32xf32, #tpu.memory_space<vmem>>, vector<8x32xf32>
    %1 = arith.truncf %0 : vector<8x32xf32> to vector<8x32xbf16>
    %c0_1 = arith.constant 0 : index
    %c0_2 = arith.constant 0 : index
    %2 = vector.load %arg2[%c0_1, %c0_2] : memref<32x64xbf16, #tpu.memory_space<vmem>>, vector<32x64xbf16>
    %cst = arith.constant dense<0.000000e+00> : vector<8x64xf32>
    %3 = tpu.matmul %1, %2, %cst {dimension_numbers = #tpu.dot_dimension_numbers<[1], [0], [0], [1], [0, 0, 1, 1], [], []>} : vector<8x32xbf16>, vector<32x64xbf16>, vector<8x64xf32> -> vector<8x64xf32>
    %c0_3 = arith.constant 0 : index
    %c0_4 = arith.constant 0 : index
    %4 = vector.load %arg3[%c0_3, %c0_4] : memref<1x64xf32, #tpu.memory_space<vmem>>, vector<1x64xf32>
    %5 = vector.broadcast %4 : vector<1x64xf32> to vector<8x64xf32>
    %6 = arith.addf %3, %5 : vector<8x64xf32>
    %cst_5 = arith.constant 0.000000e+00 : f32
    %7 = vector.broadcast %cst_5 : f32 to vector<8x64xf32>
    %8 = arith.maximumf %6, %7 : vector<8x64xf32>
    %9 = arith.truncf %8 : vector<8x64xf32> to vector<8x64xbf16>
    %c0_6 = arith.constant 0 : index
    %c0_7 = arith.constant 0 : index
    %10 = vector.load %arg4[%c0_6, %c0_7] : memref<64x32xbf16, #tpu.memory_space<vmem>>, vector<64x32xbf16>
    %cst_8 = arith.constant dense<0.000000e+00> : vector<8x32xf32>
    %11 = tpu.matmul %9, %10, %cst_8 {dimension_numbers = #tpu.dot_dimension_numbers<[1], [0], [0], [1], [0, 0, 1, 1], [], []>} : vector<8x64xbf16>, vector<64x32xbf16>, vector<8x32xf32> -> vector<8x32xf32>
    %c0_9 = arith.constant 0 : index
    %c0_10 = arith.constant 0 : index
    %12 = vector.load %arg5[%c0_9, %c0_10] : memref<1x32xf32, #tpu.memory_space<vmem>>, vector<1x32xf32>
    %13 = vector.broadcast %12 : vector<1x32xf32> to vector<8x32xf32>
    %14 = arith.addf %11, %13 : vector<8x32xf32>
    %cst_11 = arith.constant 0.000000e+00 : f32
    %15 = vector.broadcast %cst_11 : f32 to vector<8x32xf32>
    %16 = arith.maximumf %14, %15 : vector<8x32xf32>
    %17 = arith.truncf %16 : vector<8x32xf32> to vector<8x32xbf16>
    %c0_12 = arith.constant 0 : index
    %c0_13 = arith.constant 0 : index
    %18 = vector.load %arg6[%c0_12, %c0_13] : memref<32x128xbf16, #tpu.memory_space<vmem>>, vector<32x128xbf16>
    %cst_14 = arith.constant dense<0.000000e+00> : vector<8x128xf32>
    %19 = tpu.matmul %17, %18, %cst_14 {dimension_numbers = #tpu.dot_dimension_numbers<[1], [0], [0], [1], [0, 0, 1, 1], [], []>} : vector<8x32xbf16>, vector<32x128xbf16>, vector<8x128xf32> -> vector<8x128xf32>
    %c0_15 = arith.constant 0 : index
    %c0_16 = arith.constant 0 : index
    %20 = vector.load %arg7[%c0_15, %c0_16] : memref<1x128xf32, #tpu.memory_space<vmem>>, vector<1x128xf32>
    %21 = vector.broadcast %20 : vector<1x128xf32> to vector<8x128xf32>
    %22 = arith.addf %19, %21 : vector<8x128xf32>
    %23 = vector.extract_strided_slice %22 {offsets = [0, 0], sizes = [8, 16], strides = [1, 1]} : vector<8x128xf32> to vector<8x16xf32>
    %cst_17 = arith.constant dense<0xFF800000> : vector<8xf32>
    %24 = vector.multi_reduction <maximumf>, %23, %cst_17 [1] : vector<8x16xf32> to vector<8xf32>
    %25 = vector.shape_cast %24 : vector<8xf32> to vector<8x1xf32>
    %26 = vector.shape_cast %25 : vector<8x1xf32> to vector<8x1xf32>
    %27 = vector.broadcast %26 : vector<8x1xf32> to vector<8x16xf32>
    %28 = vector.extract_strided_slice %22 {offsets = [0, 16], sizes = [8, 16], strides = [1, 1]} : vector<8x128xf32> to vector<8x16xf32>
    %cst_18 = arith.constant dense<0xFF800000> : vector<8xf32>
    %29 = vector.multi_reduction <maximumf>, %28, %cst_18 [1] : vector<8x16xf32> to vector<8xf32>
    %30 = vector.shape_cast %29 : vector<8xf32> to vector<8x1xf32>
    %31 = vector.shape_cast %30 : vector<8x1xf32> to vector<8x1xf32>
    %32 = vector.broadcast %31 : vector<8x1xf32> to vector<8x16xf32>
    %33 = vector.extract_strided_slice %22 {offsets = [0, 32], sizes = [8, 16], strides = [1, 1]} : vector<8x128xf32> to vector<8x16xf32>
    %cst_19 = arith.constant dense<0xFF800000> : vector<8xf32>
    %34 = vector.multi_reduction <maximumf>, %33, %cst_19 [1] : vector<8x16xf32> to vector<8xf32>
    %35 = vector.shape_cast %34 : vector<8xf32> to vector<8x1xf32>
    %36 = vector.shape_cast %35 : vector<8x1xf32> to vector<8x1xf32>
    %37 = vector.broadcast %36 : vector<8x1xf32> to vector<8x16xf32>
    %38 = vector.extract_strided_slice %22 {offsets = [0, 48], sizes = [8, 16], strides = [1, 1]} : vector<8x128xf32> to vector<8x16xf32>
    %cst_20 = arith.constant dense<0xFF800000> : vector<8xf32>
    %39 = vector.multi_reduction <maximumf>, %38, %cst_20 [1] : vector<8x16xf32> to vector<8xf32>
    %40 = vector.shape_cast %39 : vector<8xf32> to vector<8x1xf32>
    %41 = vector.shape_cast %40 : vector<8x1xf32> to vector<8x1xf32>
    %42 = vector.broadcast %41 : vector<8x1xf32> to vector<8x16xf32>
    %43 = vector.extract_strided_slice %22 {offsets = [0, 64], sizes = [8, 16], strides = [1, 1]} : vector<8x128xf32> to vector<8x16xf32>
    %cst_21 = arith.constant dense<0xFF800000> : vector<8xf32>
    %44 = vector.multi_reduction <maximumf>, %43, %cst_21 [1] : vector<8x16xf32> to vector<8xf32>
    %45 = vector.shape_cast %44 : vector<8xf32> to vector<8x1xf32>
    %46 = vector.shape_cast %45 : vector<8x1xf32> to vector<8x1xf32>
    %47 = vector.broadcast %46 : vector<8x1xf32> to vector<8x16xf32>
    %48 = vector.extract_strided_slice %22 {offsets = [0, 80], sizes = [8, 16], strides = [1, 1]} : vector<8x128xf32> to vector<8x16xf32>
    %cst_22 = arith.constant dense<0xFF800000> : vector<8xf32>
    %49 = vector.multi_reduction <maximumf>, %48, %cst_22 [1] : vector<8x16xf32> to vector<8xf32>
    %50 = vector.shape_cast %49 : vector<8xf32> to vector<8x1xf32>
    %51 = vector.shape_cast %50 : vector<8x1xf32> to vector<8x1xf32>
    %52 = vector.broadcast %51 : vector<8x1xf32> to vector<8x16xf32>
    %53 = vector.extract_strided_slice %22 {offsets = [0, 96], sizes = [8, 16], strides = [1, 1]} : vector<8x128xf32> to vector<8x16xf32>
    %cst_23 = arith.constant dense<0xFF800000> : vector<8xf32>
    %54 = vector.multi_reduction <maximumf>, %53, %cst_23 [1] : vector<8x16xf32> to vector<8xf32>
    %55 = vector.shape_cast %54 : vector<8xf32> to vector<8x1xf32>
    %56 = vector.shape_cast %55 : vector<8x1xf32> to vector<8x1xf32>
    %57 = vector.broadcast %56 : vector<8x1xf32> to vector<8x16xf32>
    %58 = vector.extract_strided_slice %22 {offsets = [0, 112], sizes = [8, 16], strides = [1, 1]} : vector<8x128xf32> to vector<8x16xf32>
    %cst_24 = arith.constant dense<0xFF800000> : vector<8xf32>
    %59 = vector.multi_reduction <maximumf>, %58, %cst_24 [1] : vector<8x16xf32> to vector<8xf32>
    %60 = vector.shape_cast %59 : vector<8xf32> to vector<8x1xf32>
    %61 = vector.shape_cast %60 : vector<8x1xf32> to vector<8x1xf32>
    %62 = vector.broadcast %61 : vector<8x1xf32> to vector<8x16xf32>
    %63 = tpu.concatenate %27, %32, %37, %42, %47, %52, %57, %62 in 1 : vector<8x16xf32>, vector<8x16xf32>, vector<8x16xf32>, vector<8x16xf32>, vector<8x16xf32>, vector<8x16xf32>, vector<8x16xf32>, vector<8x16xf32> -> vector<8x128xf32>
    %64 = arith.subf %22, %63 : vector<8x128xf32>
    %65 = math.exp %64 : vector<8x128xf32>
    %66 = arith.truncf %65 : vector<8x128xf32> to vector<8x128xbf16>
    %c0_25 = arith.constant 0 : index
    %c0_26 = arith.constant 0 : index
    %67 = vector.load %arg8[%c0_25, %c0_26] : memref<128x128xbf16, #tpu.memory_space<vmem>>, vector<128x128xbf16>
    %cst_27 = arith.constant dense<0.000000e+00> : vector<8x128xf32>
    %68 = tpu.matmul %66, %67, %cst_27 {dimension_numbers = #tpu.dot_dimension_numbers<[1], [0], [0], [1], [0, 0, 1, 1], [], []>} : vector<8x128xbf16>, vector<128x128xbf16>, vector<8x128xf32> -> vector<8x128xf32>
    %69 = tpu.reciprocal %68 {approx = true} : vector<8x128xf32> -> vector<8x128xf32>
    %70 = arith.extf %66 : vector<8x128xbf16> to vector<8x128xf32>
    %71 = arith.mulf %70, %69 : vector<8x128xf32>
    %c0_28 = arith.constant 0 : index
    %c0_29 = arith.constant 0 : index
    %72 = vector.load %arg9[%c0_28, %c0_29] : memref<8x128xf32, #tpu.memory_space<vmem>>, vector<8x128xf32>
    tpu.vector_store %arg9[%c0_28, %c0_29], %71 {strides = array<i32>} : memref<8x128xf32, #tpu.memory_space<vmem>>, vector<8x128xf32>,
    return
  }
  func.func @transform_0(%arg0: i32) -> (i32, i32) {
    %c0_i32 = arith.constant 0 : i32
    %c0_i32_0 = arith.constant 0 : i32
    return %arg0, %c0_i32 : i32, i32
  }
  func.func @transform_1(%arg0: i32) -> (i32, i32) {
    %c0_i32 = arith.constant 0 : i32
    %c0_i32_0 = arith.constant 0 : i32
    %c0_i32_1 = arith.constant 0 : i32
    return %c0_i32, %c0_i32_0 : i32, i32
  }
  func.func @transform_2(%arg0: i32) -> (i32, i32) {
    %c0_i32 = arith.constant 0 : i32
    %c0_i32_0 = arith.constant 0 : i32
    %c0_i32_1 = arith.constant 0 : i32
    return %c0_i32, %c0_i32_0 : i32, i32
  }
  func.func @transform_3(%arg0: i32) -> (i32, i32) {
    %c0_i32 = arith.constant 0 : i32
    %c0_i32_0 = arith.constant 0 : i32
    %c0_i32_1 = arith.constant 0 : i32
    return %c0_i32, %c0_i32_0 : i32, i32
  }
  func.func @transform_4(%arg0: i32) -> (i32, i32) {
    %c0_i32 = arith.constant 0 : i32
    %c0_i32_0 = arith.constant 0 : i32
    %c0_i32_1 = arith.constant 0 : i32
    return %c0_i32, %c0_i32_0 : i32, i32
  }
  func.func @transform_5(%arg0: i32) -> (i32, i32) {
    %c0_i32 = arith.constant 0 : i32
    %c0_i32_0 = arith.constant 0 : i32
    %c0_i32_1 = arith.constant 0 : i32
    return %c0_i32, %c0_i32_0 : i32, i32
  }
  func.func @transform_6(%arg0: i32) -> (i32, i32) {
    %c0_i32 = arith.constant 0 : i32
    %c0_i32_0 = arith.constant 0 : i32
    %c0_i32_1 = arith.constant 0 : i32
    return %c0_i32, %c0_i32_0 : i32, i32
  }
  func.func @transform_7(%arg0: i32) -> (i32, i32) {
    %c0_i32 = arith.constant 0 : i32
    %c0_i32_0 = arith.constant 0 : i32
    %c0_i32_1 = arith.constant 0 : i32
    return %c0_i32, %c0_i32_0 : i32, i32
  }
  func.func @transform_8(%arg0: i32) -> (i32, i32) {
    %c0_i32 = arith.constant 0 : i32
    %c0_i32_0 = arith.constant 0 : i32
    return %arg0, %c0_i32 : i32, i32
  }
}

</mosaic_0001>

<bundles_post_ra>
// kernel: actor_forward.1
= control target key start
LH: loop header
LB: loop body
LE: loop exit
PB: predicated region body
PF: predicated region fallthrough
CT: control target
= control target key end

     0   :  { %13 = vsyncpa [#allocation3], 0  ;;  %s870_s0 = inlined_call_operand.vmem [shape: f32[8,32], index: 0, kind: input, shape index: {}]   ;;  %s871_s1 = inlined_call_operand.hbm [shape: bf16[32,64], index: 1, kind: input, shape index: {}]   ;;  %s872_s2 = inlined_call_operand.vmem [shape: f32[1,64], index: 2, kind: input, shape index: {}]   ;;  %s873_s3 = inlined_call_operand.vmem [shape: bf16[64,32], index: 3, kind: input, shape index: {}]   ;;  %s874_s4 = inlined_call_operand.vmem [shape: f32[1,32], index: 4, kind: input, shape index: {}]   ;;  %s875_s5 = inlined_call_operand.hbm [shape: bf16[32,128], index: 5, kind: input, shape index: {}]   ;;  %s876_s6 = inlined_call_operand.hbm [shape: f32[1,128], index: 6, kind: input, shape index: {}]   ;;  %s877_s7 = inlined_call_operand.vmem [shape: bf16[128,128], index: 7, kind: input, shape index: {}]   ;;  %s878_s8 = inlined_call_operand.hbm [shape: f32[8,128], index: 8, kind: output, shape index: {}]  }
   0x1   :  { %14 = vsyncpa [#allocation6], 0 }
   0x2   :  { %15 = vsyncpa [#allocation4], 0  ;;  %s675_s27 = smov [#allocation5]   ;;  %s676_s29 = smov [#allocation2]  }
   0x3   :  { %s41_s28 = sshll.u32 %s675_s27, 4  ;;  %s23_s30 = sshll.u32 %s676_s29, 4  ;;  %s42_s28 = int_to_ptr.vmem [resolvable:$true] %s41_s28  ;;  %s728_s30 = int_to_ptr.vmem [resolvable:$true] %s23_s30 }
   0x4   :  { %s581_s11 = scalar_lea.hbm %s875_s5, 256 }
   0x5   :  { %p582_p0 = scmp.ne.s32.totalorder %s875_s5, %s581_s11  ;;  %p585_p1 = scmp.lt.u32.totalorder %s581_s11, %s875_s5 }
   0x7   :  { %p587_p2 = pnand %p585_p1, %p582_p0 }
   0x9   :  { %590 = shalt.err (!%p587_p2)
}
   0xa   :  { %s591_s16 = scalar_lea.vmem %s42_s28, 256  ;;  %p596_p4 = scmp.lt.s32.totalorder %s42_s28, %s42_s28 }
   0xb   :  { %p592_p3 = scmp.ne.s32.totalorder %s42_s28, %s591_s16  ;;  %p597_p5 = scmp.lt.s32.totalorder %s591_s16, %s591_s16 }
   0xd   :  { %p598_p6 = por %p597_p5, %p596_p4 }
   0xf   :  { %p599_p7 = pnand %p598_p6, %p592_p3 }
  0x11   :  { %602 = shalt.err (!%p599_p7)
}
  0x12   :  { %s677_s17 = smov 64   ;;  %s678_s18 = smov 4  }
  0x13   :  { %47 = dma.hbm_to_vmem [thread:$0]  %s875_s5, 256, %s42_s28, [#allocation6], %s677_s17, %s677_s17, %s678_s18  }
  0x14   :  { %s603_s23 = scalar_lea.hbm %s871_s1, 256 }
  0x15   :  { %p604_p8 = scmp.ne.s32.totalorder %s871_s1, %s603_s23  ;;  %p607_p9 = scmp.lt.u32.totalorder %s603_s23, %s871_s1 }
  0x17   :  { %p609_p10 = pnand %p607_p9, %p604_p8 }
  0x19   :  { %612 = shalt.err (!%p609_p10)
}
  0x1a   :  { %s613_s29 = scalar_lea.vmem %s728_s30, 256  ;;  %p618_p12 = scmp.lt.s32.totalorder %s728_s30, %s728_s30 }
  0x1b   :  { %p614_p11 = scmp.ne.s32.totalorder %s728_s30, %s613_s29  ;;  %p619_p13 = scmp.lt.s32.totalorder %s613_s29, %s613_s29 }
  0x1d   :  { %p620_p0 = por %p619_p13, %p618_p12 }
  0x1f   :  { %p621_p1 = pnand %p620_p0, %p614_p11 }
  0x21   :  { %624 = shalt.err (!%p621_p1)
}
  0x22   :  { %29 = dma.hbm_to_vmem [thread:$0]  %s871_s1, 256, %s728_s30, [#allocation3], %s677_s17, %s677_s17, %s678_s18  }
  0x23   :  { %s679_s9 = smov [#allocation7]   ;;  %s625_s13 = scalar_lea.hbm %s876_s6, 16 }
  0x24   :  { %s54_s10 = sshll.u32 %s679_s9, 4  ;;  %p626_p2 = scmp.ne.s32.totalorder %s876_s6, %s625_s13  ;;  %s55_s10 = int_to_ptr.vmem [resolvable:$true] %s54_s10 }
  0x25   :  { %p629_p3 = scmp.lt.u32.totalorder %s625_s13, %s876_s6 }
  0x27   :  { %p631_p4 = pnand %p629_p3, %p626_p2 }
  0x29   :  { %634 = shalt.err (!%p631_p4)
}
  0x2a   :  { %s635_s20 = scalar_lea.vmem %s55_s10, 16  ;;  %s639_s1 = scalar_lea.vmem %s55_s10, 32 }
  0x2b   :  { %p636_p5 = scmp.ne.s32.totalorder %s55_s10, %s635_s20  ;;  %p640_p6 = scmp.lt.s32.totalorder %s55_s10, %s55_s10 }
  0x2c   :  { %p641_p7 = scmp.lt.s32.totalorder %s639_s1, %s635_s20 }
  0x2e   :  { %p642_p8 = por %p641_p7, %p640_p6 }
  0x30   :  { %p643_p9 = pnand %p642_p8, %p636_p5 }
  0x32   :  { %646 = shalt.err (!%p643_p9)
}
  0x33   :  { %57 = dma.hbm_to_vmem [thread:$0]  %s876_s6, 16, %s55_s10, [#allocation6]  }
  0x34   :  { %669 = dma.done.wait [#allocation3], 256  }
  0x35   :  { %670 = vsyncadd [#allocation3], 4294967040 }
  0x36   :  { %671 = dma.done.wait [#allocation6], 272  }
  0x37   :  { %672 = vsyncadd [#allocation6], 4294967024  ;;  %v680_v0 = vmov 0.0   ;;  %vm681_vm0 = vmmov 0   ;;  %v561_v1 = vld [vmem:[#allocation2] sm:$0xff]   ;;  %v562_v2 = vld [vmem:[#allocation2 + $0x8] sm:$0xff]  }
  0x38   :  { %505 = vmatprep.subr.bf16.mxu1 %v680_v0  ;;  %509 = vmatprep.mubr.msk.bf16.mxu1 %vm681_vm0, %v680_v0  ;;  %v70_v3 = vld [vmem:[%s870_s0] sm:$0xff]  ;;  %vm95_vm1 = vcmask 261120   ;;  %v564_v6 = vld [vmem:[%s873_s3 + $0x8] sm:$0xff]   ;;  %v565_v7 = vld [vmem:[%s873_s3 + $0x10] sm:$0xff]   ;;  %vm180_vm2 = vcmask 523264   ;;  %vm300_vm3 = vcmask 392448  }
  0x39   :  { %533 = vmatprep.subr.bf16.mxu0 %v680_v0  ;;  %549 = vmatprep.mubr.msk.bf16.mxu0 %vm681_vm0, %v680_v0  ;;  %v563_v4 = vld [vmem:[%s873_s3] sm:$0xff]   ;;  %v71_v5 = vpack.c.bf16 %v70_v3, %v70_v3  ;;  %v566_v8 = vld [vmem:[%s873_s3 + $0x18] sm:$0xff]   ;;  %v567_v16 = vld [vmem:[#allocation5] sm:$0xff]   ;;  %vm292_vm4 = vcmask 130048   ;;  %vm304_vm5 = vcmask 523648   ;;  %vm296_vm6 = vcmask 261248  }
  0x3a   :  { %506 = vmatpush3.bf16.msra.mxu1 %v561_v1  ;;  %v463_v9 = vld [vmem:[%s872_s2] ss:$0 sm:$0xff]  ;;  %v568_v18 = vld [vmem:[#allocation5 + $0x8] sm:$0xff]   ;;  %vm312_vm7 = vcmask 786048   ;;  %vm308_vm8 = vcmask 654848   ;;  %vm320_vm9 = vcmask 1048448  }
  0x3b   :  { %507 = vmatprep.subr.bf16.mxu1 %v680_v0  ;;  %v467_v19 = vld [vmem:[%s874_s4] ss:$0 sm:$0xff]  ;;  %vm316_vm10 = vcmask 917248   ;;  %v570_v42 = vld [vmem:[%s877_s7 + $0x8] sm:$0xff]   ;;  %v571_v43 = vld [vmem:[%s877_s7 + $0x10] sm:$0xff]   ;;  %vm326_vm11 = vcmask 392192  }
  0x3c   :  { %v473_v27 = vld [vmem:[#allocation7] ss:$0 sm:$0xff]  ;;  %v572_v44 = vld [vmem:[%s877_s7 + $0x18] sm:$0xff]   ;;  %v574_v46 = vld [vmem:[%s877_s7 + $0x28] sm:$0xff]   ;;  %vm329_vm12 = vcmask 654336   ;;  %vm331_vm13 = vcmask 785408  }
  0x3d   :  { %v569_v41 = vld [vmem:[%s877_s7] sm:$0xff]   ;;  %v575_v47 = vld [vmem:[%s877_s7 + $0x30] sm:$0xff]   ;;  %v576_v48 = vld [vmem:[%s877_s7 + $0x38] sm:$0xff]   ;;  %vm333_vm14 = vcmask 916480  }
  0x3e   :  { %508 = vmatpush3.bf16.msra.mxu1 %v562_v2  ;;  %534 = vmatpush3.bf16.msra.mxu0 %v569_v41  ;;  %v573_v45 = vld [vmem:[%s877_s7 + $0x20] sm:$0xff]   ;;  %s682_s7 = smov [#allocation8]  }
  0x3f   :  { %513 = vmatprep.subr.bf16.mxu1 %v680_v0  ;;  %535 = vmatprep.subr.bf16.mxu0 %v680_v0  ;;  %s453_s18 = sshll.u32 %s682_s7, 4  ;;  %s454_s18 = int_to_ptr.vmem [resolvable:$true] %s453_s18 }
  0x40   :  { %s647_s21 = scalar_lea.vmem %s454_s18, 128  ;;  %p652_p11 = scmp.lt.s32.totalorder %s454_s18, %s454_s18 }
  0x41   :  { %510 = vmatmul.mubr.msk.bf16.vlgmr.msra.gmra.mrb[0].mxu1 %vm95_vm1, %v71_v5  ;;  %p648_p10 = scmp.ne.s32.totalorder %s454_s18, %s647_s21  ;;  %p653_p12 = scmp.lt.s32.totalorder %s647_s21, %s647_s21 }
  0x42   :  { %514 = vmatpush3.bf16.msra.mxu1 %v563_v4  ;;  %521 = vmatprep.mubr.msk.bf16.mxu1 %vm681_vm0, %v680_v0 }
  0x43   :  { %515 = vmatprep.subr.bf16.mxu1 %v680_v0  ;;  %536 = vmatpush3.bf16.msra.mxu0 %v570_v42  ;;  %p654_p13 = por %p653_p12, %p652_p11 }
  0x44   :  { %537 = vmatprep.subr.bf16.mxu0 %v680_v0 }
  0x45   :  { %p655_p0 = pnand %p654_p13, %p648_p10 }
  0x46   :  { %516 = vmatpush3.bf16.msra.mxu1 %v564_v6 }
  0x47   :  { %517 = vmatprep.subr.bf16.mxu1 %v680_v0  ;;  %538 = vmatpush3.bf16.msra.mxu0 %v571_v43 }
  0x48   :  { %539 = vmatprep.subr.bf16.mxu0 %v680_v0 }
  0x4a   :  { %518 = vmatpush3.bf16.msra.mxu1 %v565_v7 }
  0x4b   :  { %519 = vmatprep.subr.bf16.mxu1 %v680_v0  ;;  %540 = vmatpush3.bf16.msra.mxu0 %v572_v44 }
  0x4c   :  { %541 = vmatprep.subr.bf16.mxu0 %v680_v0 }
  0x4e   :  { %520 = vmatpush3.bf16.msra.mxu1 %v566_v8 }
  0x4f   :  { %525 = vmatprep.subr.bf16.mxu1 %v680_v0  ;;  %542 = vmatpush3.bf16.msra.mxu0 %v573_v45 }
  0x50   :  { %543 = vmatprep.subr.bf16.mxu0 %v680_v0 }
  0x53   :  { %544 = vmatpush3.bf16.msra.mxu0 %v574_v46 }
  0x54   :  { %545 = vmatprep.subr.bf16.mxu0 %v680_v0 }
  0x57   :  { %546 = vmatpush3.bf16.msra.mxu0 %v575_v47 }
  0x58   :  { %547 = vmatprep.subr.bf16.mxu0 %v680_v0 }
  0x5b   :  { %548 = vmatpush3.bf16.msra.mxu0 %v576_v48 }
 0x114   :  { %v133_v10 = vpop.f32.mrb[0].mxu1 }
 0x115   :  { %v134_v11 = vadd.f32 %v463_v9, %v133_v10  ;;  %v511_v12 = vpop.f32.mrb[1].mxu1 }
 0x116   :  { %v136_v13 = vpop.f32.mrb[2].mxu1 }
 0x117   :  { %v139_v14 = vmax.f32 %v134_v11, 0.0  ;;  %v512_v15 = vpop.f32.mrb[3].mxu1 }
 0x119   :  { %v140_v17 = vpack.c.bf16 %v139_v14, %v139_v14 }
 0x11b   :  { %522 = vmatmul.mubr.msk.bf16.vlgmr.msra.gmra.mrb[4].mxu1 %vm180_vm2, %v140_v17 }
 0x11c   :  { %526 = vmatpush3.bf16.msra.mxu1 %v567_v16  ;;  %529 = vmatprep.mubr.msk.bf16.mxu1 %vm681_vm0, %v680_v0 }
 0x11d   :  { %527 = vmatprep.subr.bf16.mxu1 %v680_v0 }
 0x120   :  { %528 = vmatpush3.bf16.msra.mxu1 %v568_v18 }
 0x1ee   :  { %v218_v20 = vpop.f32.mrb[4].mxu1 }
 0x1ef   :  { %v219_v21 = vadd.f32 %v467_v19, %v218_v20  ;;  %v523_v22 = vpop.f32.mrb[5].mxu1 }
 0x1f0   :  { %v221_v23 = vpop.f32.mrb[6].mxu1 }
 0x1f1   :  { %v224_v24 = vmax.f32 %v219_v21, 0.0  ;;  %v524_v25 = vpop.f32.mrb[7].mxu1 }
 0x1f3   :  { %v225_v26 = vpack.c.bf16 %v224_v24, %v224_v24 }
 0x1f5   :  { %530 = vmatmul.mubr.msk.bf16.vlgmr.msra.gmra.mrb[8].mxu1 %vm95_vm1, %v225_v26 }
 0x2c8   :  { %v286_v28 = vpop.f32.mrb[8].mxu1 }
 0x2c9   :  { %v812_v29 = vadd.f32 %v473_v27, %v286_v28  ;;  %v531_v30 = vpop.f32.mrb[9].mxu1 }
 0x2ca   :  { %v289_v31 = vpop.f32.mrb[10].mxu1 }
 0x2cb   :  { %v532_v32 = vpop.f32.mrb[11].mxu1  ;;  %v301_v33 = vsel %vm300_vm3, %v812_v29, -inf  ;;  %v293_v34 = vsel %vm292_vm4, %v812_v29, -inf  ;;  %v305_v35 = vsel %vm304_vm5, %v812_v29, -inf  ;;  %v297_v36 = vsel %vm296_vm6, %v812_v29, -inf }
 0x2cc   :  { %302 = vmax.xlane.f32.xlu1 %v301_v33  ;;  %294 = vmax.xlane.f32.xlu0 %v293_v34  ;;  %v313_v37 = vsel %vm312_vm7, %v812_v29, -inf  ;;  %v309_v38 = vsel %vm308_vm8, %v812_v29, -inf  ;;  %v321_v39 = vsel %vm320_vm9, %v812_v29, -inf  ;;  %v317_v40 = vsel %vm316_vm10, %v812_v29, -inf }
 0x2d0   :  { %306 = vmax.xlane.f32.xlu1 %v305_v35  ;;  %298 = vmax.xlane.f32.xlu0 %v297_v36 }
 0x2d4   :  { %314 = vmax.xlane.f32.xlu1 %v313_v37  ;;  %310 = vmax.xlane.f32.xlu0 %v309_v38 }
 0x2d8   :  { %322 = vmax.xlane.f32.xlu1 %v321_v39  ;;  %318 = vmax.xlane.f32.xlu0 %v317_v40 }
 0x359   :  { %v303_v49 = vpop.xlane.xlu1 %302  ;;  %v295_v50 = vpop.xlane.xlu0 %294 }
 0x35d   :  { %v307_v51 = vpop.xlane.xlu1 %306  ;;  %v299_v52 = vpop.xlane.xlu0 %298 }
 0x35e   :  { %v324_v53 = vsel %vm292_vm4, %v295_v50, %v299_v52 }
 0x35f   :  { %v325_v54 = vsel %vm95_vm1, %v324_v53, %v303_v49 }
 0x360   :  { %v327_v55 = vsel %vm326_vm11, %v325_v54, %v307_v51 }
 0x361   :  { %v315_v56 = vpop.xlane.xlu1 %314  ;;  %v311_v57 = vpop.xlane.xlu0 %310 }
 0x362   :  { %v328_v58 = vsel %vm180_vm2, %v327_v55, %v311_v57 }
 0x363   :  { %v330_v60 = vsel %vm329_vm12, %v328_v58, %v315_v56 }
 0x365   :  { %v323_v59 = vpop.xlane.xlu1 %322  ;;  %v319_v61 = vpop.xlane.xlu0 %318 }
 0x366   :  { %v332_v62 = vsel %vm331_vm13, %v330_v60, %v319_v61 }
 0x367   :  { %v334_v63 = vsel %vm333_vm14, %v332_v62, %v323_v59 }
 0x368   :  { %v335_v0 = vsub.f32 %v812_v29, %v334_v63 }
 0x36a   :  { %v336_v1 = vmul.f32 1.442695, %v335_v0 }
 0x36c   :  { %577 = vpow2.f32 %v336_v1 }
 0x376   :  { %v578_v2 = vpop.eup %577 }
 0x377   :  { %v338_v3 = vpack.c.bf16 %v578_v2, %v578_v2 }
 0x379   :  { %550 = vmatmul.mubr.bf16.vlgmr.msra.gmra.mrb[0].mxu0 %v338_v3  ;;  %v444_v8 = vunpack.c.l.bf16 %v338_v3 }
 0x44c   :  { %v437_v4 = vpop.f32.mrb[0].mxu0 }
 0x44d   :  { %579 = vrcp.f32 %v437_v4  ;;  %v551_v5 = vpop.f32.mrb[1].mxu0 }
 0x44e   :  { %v440_v6 = vpop.f32.mrb[2].mxu0 }
 0x44f   :  { %v552_v7 = vpop.f32.mrb[3].mxu0 }
 0x457   :  { %v580_v9 = vpop.eup %579 }
 0x458   :  { %v445_v10 = vmul.f32 %v580_v9, %v444_v8 }
 0x45a   :  { %446 = vst [vmem:[#allocation8] sm:$0xff] %v445_v10 }
 0x45b   :  { %658 = shalt.err (!%p655_p0)
}
 0x45c   :  { %s659_s24 = scalar_lea.hbm %s878_s8, 128 }
 0x45d   :  { %p660_p1 = scmp.ne.s32.totalorder %s878_s8, %s659_s24  ;;  %p663_p2 = scmp.lt.u32.totalorder %s659_s24, %s878_s8 }
 0x45f   :  { %p665_p3 = pnand %p663_p2, %p660_p1 }
 0x461   :  { %668 = shalt.err (!%p665_p3)
}
 0x462   :  { %456 = dma.vmem_to_hbm [thread:$0]  %s454_s18, 128, %s878_s8, [#allocation4]  }
 0x463   :  { %673 = dma.done.wait [#allocation4], 128  }
 0x464   :  { %674 = vsyncadd [#allocation4], 4294967168 }
 0x465   :  { %460 = vsyncpa [#allocation3], 1 }
 0x466   :  { %461 = vsyncpa [#allocation6], 1 }
 0x467   :  { %462 = vsyncpa [#allocation4], 1 }

</bundles_post_ra>
